<compile_context>
chip_gen: v7x
topology: tpu7x:2x2x1
jax: 0.10.0
libtpu: 0.0.40
codegen_flags: <defaults>
</compile_context>

<pallas_src>
import functools

import jax
import jax.numpy as jnp
from jax import lax
from jax.experimental import pallas as pl
from jax.experimental.pallas import tpu as pltpu

_LANE = 128
_EPS = 1e-6
_TARGET_BLOCK_BYTES = 2 * 1024 * 1024   # ~2 MiB per input per grid step


def _sublane_multiple(dtype) -> int:
    # Minimum sublane multiple for the second-to-last block dim
    # (f32 -> 8, bf16 -> 16, int8/fp8 -> 32).
    itemsize = jnp.dtype(dtype).itemsize
    return max(8, 32 // itemsize)


def _num_tensorcores() -> int:
    # v7x has 2 TensorCores per chip; v5e/v6e have 1.  Best-effort detection,
    # defaulting to the safe single-core grid.
    try:
        kind = jax.devices()[0].device_kind.lower()
    except Exception:
        return 1
    return 2 if "v7" in kind else 1


def _vmem_limit_bytes() -> int:
    # Keep the scoped-VMEM request well under each generation's physical VMEM
    # (v7x: 64 MiB/TC, v5e/v6e: 128 MiB).  32 MiB comfortably covers the
    # double-buffered ~2 MiB input blocks plus f32 intermediates.
    try:
        cap = int(pltpu.get_tpu_info().vmem_capacity_bytes)
    except Exception:
        cap = 64 * 1024 * 1024
    return max(16 * 1024 * 1024, min(32 * 1024 * 1024, cap // 2))


def _rmse_partial_kernel(x_ref, y_ref, o_ref, acc_ref, *,
                         rows, tile_rows, steps_per_core, num_blocks,
                         num_cores):
    if num_cores > 1:
        c = pl.program_id(0)
        i = pl.program_id(1)
    else:
        c = 0
        i = pl.program_id(0)

    @pl.when(i == 0)
    def _():
        acc_ref[...] = jnp.zeros_like(acc_ref)

    def sq_tile():
        # Upcast in-kernel; inputs are DMA'd in native dtype.
        d = x_ref[...].astype(jnp.float32) - y_ref[...].astype(jnp.float32)
        return d * d

    def accumulate(sq):
        # Layout-preserving split of the sublane dim: (tile_rows, 128) ->
        # (tile_rows//8, 8, 128).  The leading-axis sum is pure per-vreg VPU
        # adds into a single-vreg accumulator (no full-tile VMEM RMW, no
        # per-step cross-lane/XLU work).
        acc_ref[...] += sq.reshape(tile_rows // 8, 8, _LANE).sum(axis=0)

    has_partial = (rows % tile_rows) != 0                    # static
    has_oob = (num_cores * steps_per_core) != num_blocks     # static

    if not has_partial and not has_oob:
        # Fast path: every block is full and in range -> no masking at all.
        accumulate(sq_tile())
    else:
        blk = c * steps_per_core + i
        if has_partial:
            @pl.when(blk < num_blocks - 1)
            def _():
                accumulate(sq_tile())

            @pl.when(blk == num_blocks - 1)
            def _():
                # Only the single ragged last block pays iota + cmp + select.
                row_ids = ((num_blocks - 1) * tile_rows
                           + lax.broadcasted_iota(jnp.int32, (tile_rows, _LANE), 0))
                accumulate(jnp.where(row_ids < rows, sq_tile(), 0.0))
        else:
            # Full blocks only; just skip clamped out-of-range duplicates.
            @pl.when(blk < num_blocks)
            def _():
                accumulate(sq_tile())

    @pl.when(i == steps_per_core - 1)
    def _():
        # One tiny (8,128) write per core; the cross-lane reduce happens in
        # the wrapper on <= num_cores * 4 KiB of data.
        o_ref[...] = acc_ref[...]


def rmse_loss(x, y):
    assert x.shape == y.shape, "x and y must have the same shape"
    n = int(x.size)

    # Flatten in native dtype (free reshape for contiguous arrays, no astype).
    xf = jnp.reshape(x, (-1,))
    yf = jnp.reshape(y, (-1,))

    pad = (-n) % _LANE
    if pad:
        # Rare fallback (n not a multiple of 128): zero-pad so the slab is
        # lane-dense.  Zeros contribute 0 to the sum; mean divides by the
        # unpadded n.
        # TODO(synk): ragged tails could avoid this extra HBM copy with
        # element-granularity in-kernel masking over the flat array.
        xf = jnp.pad(xf, (0, pad))
        yf = jnp.pad(yf, (0, pad))
    rows = (n + pad) // _LANE
    x2 = xf.reshape(rows, _LANE)
    y2 = yf.reshape(rows, _LANE)

    # Dtype-scaled streaming tile: ~_TARGET_BLOCK_BYTES per input block.
    max_itemsize = max(jnp.dtype(x.dtype).itemsize, jnp.dtype(y.dtype).itemsize)
    sub = max(_sublane_multiple(x.dtype), _sublane_multiple(y.dtype))
    cap_rows = max(sub, (_TARGET_BLOCK_BYTES // (_LANE * max_itemsize)) // sub * sub)
    tile_rows = min(cap_rows, ((rows + sub - 1) // sub) * sub)
    num_blocks = pl.cdiv(rows, tile_rows)

    num_cores = min(_num_tensorcores(), num_blocks)
    steps_per_core = pl.cdiv(num_blocks, num_cores)

    if num_cores > 1:
        grid = (num_cores, steps_per_core)

        def in_map(c, i):
            # Clamp so DMAs always stay in bounds; clamped duplicate blocks
            # skip accumulation in-kernel.
            return (jnp.minimum(c * steps_per_core + i, num_blocks - 1), 0)

        out_map = lambda c, i: (c, 0)
        semantics = (getattr(pltpu, "CORE_PARALLEL", "parallel"),
                     getattr(pltpu, "ARBITRARY", "arbitrary"))
    else:
        grid = (num_blocks,)
        in_map = lambda i: (i, 0)
        out_map = lambda i: (0, 0)
        semantics = ("arbitrary",)

    kernel = functools.partial(
        _rmse_partial_kernel,
        rows=rows,
        tile_rows=tile_rows,
        steps_per_core=steps_per_core,
        num_blocks=num_blocks,
        num_cores=num_cores,
    )

    bytes_accessed = (n * jnp.dtype(x.dtype).itemsize
                      + n * jnp.dtype(y.dtype).itemsize
                      + num_cores * 8 * _LANE * 4)

    partials = pl.pallas_call(
        kernel,
        out_shape=jax.ShapeDtypeStruct((num_cores * 8, _LANE), jnp.float32),
        grid_spec=pltpu.PrefetchScalarGridSpec(
            num_scalar_prefetch=0,
            grid=grid,
            in_specs=[
                pl.BlockSpec((tile_rows, _LANE), in_map),
                pl.BlockSpec((tile_rows, _LANE), in_map),
            ],
            out_specs=pl.BlockSpec((8, _LANE), out_map),
            scratch_shapes=[pltpu.VMEM((8, _LANE), jnp.float32)],
        ),
        compiler_params=pltpu.CompilerParams(
            dimension_semantics=semantics,
            vmem_limit_bytes=_vmem_limit_bytes(),
        ),
        cost_estimate=pl.CostEstimate(
            flops=3 * n, transcendentals=0, bytes_accessed=int(bytes_accessed)),
    )(x2, y2)

    # Combine per-core partial sums of squared error; finalize mean+eps+sqrt.
    sum_sq = jnp.sum(partials)
    loss = jnp.sqrt(sum_sq / jnp.float32(n) + jnp.float32(_EPS))

    out_dtype = jnp.result_type(x.dtype, y.dtype)
    if not jnp.issubdtype(out_dtype, jnp.floating):
        out_dtype = jnp.float32
    return loss.astype(out_dtype)


if __name__ == "__main__":
    key = jax.random.PRNGKey(0)
    kx, ky = jax.random.split(key)
    x = jax.random.normal(kx, (2, 4, 16, 16), dtype=jnp.float32)  # NCHW
    y = jax.random.normal(ky, (2, 4, 16, 16), dtype=jnp.float32)  # NCHW

    loss = rmse_loss(x, y)
    jax.block_until_ready(loss)

    # Reference check in plain JAX.
    ref = jnp.sqrt(jnp.mean((x - y) ** 2) + _EPS)
    assert jnp.allclose(loss, ref, rtol=1e-5, atol=1e-6), (loss, ref)

    print("KERNEL_OK")
</pallas_src>

<mosaic_0001>
module attributes {stable_mosaic.version = 11 : i64} {
  func.func @_rmse_partial_kernel(%arg0: i32, %arg1: memref<16x128xf32, #tpu.memory_space<vmem>>, %arg2: memref<16x128xf32, #tpu.memory_space<vmem>>, %arg3: memref<8x128xf32, #tpu.memory_space<vmem>>, %arg4: memref<8x128xf32, #tpu.memory_space<vmem>>) attributes {dimension_semantics = [#tpu.dimension_semantics<arbitrary>], iteration_bounds = array<i64: 1>, scalar_prefetch = 0 : i64, scratch_operands = 1 : i64, tpu.core_type = #tpu.core_type<tc>, window_params = [{transform_indices = @transform_0, window_bounds = array<i64: 16, 128>}, {transform_indices = @transform_1, window_bounds = array<i64: 16, 128>}, {pipeline_mode = #tpu.pipeline_mode<synchronous>, transform_indices = @transform_2, window_bounds = array<i64: 8, 128>}]} {
    %c0_i32 = arith.constant 0 : i32
    %0 = arith.cmpi eq, %arg0, %c0_i32 : i32
    %1 = arith.extui %0 : i1 to i32
    %c0_i32_0 = arith.constant 0 : i32
    %2 = arith.cmpi ne, %1, %c0_i32_0 : i32
    scf.if %2 {
      %cst_10 = arith.constant 0.000000e+00 : f32
      %15 = vector.broadcast %cst_10 : f32 to vector<8x128xf32>
      %c0_11 = arith.constant 0 : index
      %c0_12 = arith.constant 0 : index
      %16 = vector.load %arg4[%c0_11, %c0_12] : memref<8x128xf32, #tpu.memory_space<vmem>>, vector<8x128xf32>
      tpu.vector_store %arg4[%c0_11, %c0_12], %15 {strides = array<i32>} : memref<8x128xf32, #tpu.memory_space<vmem>>, vector<8x128xf32>,
    } else {
    }
    %c0 = arith.constant 0 : index
    %c0_1 = arith.constant 0 : index
    %3 = vector.load %arg1[%c0, %c0_1] : memref<16x128xf32, #tpu.memory_space<vmem>>, vector<16x128xf32>
    %c0_2 = arith.constant 0 : index
    %c0_3 = arith.constant 0 : index
    %4 = vector.load %arg2[%c0_2, %c0_3] : memref<16x128xf32, #tpu.memory_space<vmem>>, vector<16x128xf32>
    %5 = arith.subf %3, %4 : vector<16x128xf32>
    %6 = arith.mulf %5, %5 : vector<16x128xf32>
    %c0_4 = arith.constant 0 : index
    %c0_5 = arith.constant 0 : index
    %7 = vector.load %arg4[%c0_4, %c0_5] : memref<8x128xf32, #tpu.memory_space<vmem>>, vector<8x128xf32>
    %8 = vector.shape_cast %6 : vector<16x128xf32> to vector<2x8x128xf32>
    %cst = arith.constant dense<0.000000e+00> : vector<8x128xf32>
    %9 = vector.multi_reduction <add>, %8, %cst [0] : vector<2x8x128xf32> to vector<8x128xf32>
    %10 = arith.addf %7, %9 : vector<8x128xf32>
    %c0_6 = arith.constant 0 : index
    %c0_7 = arith.constant 0 : index
    %11 = vector.load %arg4[%c0_6, %c0_7] : memref<8x128xf32, #tpu.memory_space<vmem>>, vector<8x128xf32>
    tpu.vector_store %arg4[%c0_6, %c0_7], %10 {strides = array<i32>} : memref<8x128xf32, #tpu.memory_space<vmem>>, vector<8x128xf32>,
    %c0_i32_8 = arith.constant 0 : i32
    %12 = arith.cmpi eq, %arg0, %c0_i32_8 : i32
    %13 = arith.extui %12 : i1 to i32
    %c0_i32_9 = arith.constant 0 : i32
    %14 = arith.cmpi ne, %13, %c0_i32_9 : i32
    scf.if %14 {
      %c0_10 = arith.constant 0 : index
      %c0_11 = arith.constant 0 : index
      %15 = vector.load %arg4[%c0_10, %c0_11] : memref<8x128xf32, #tpu.memory_space<vmem>>, vector<8x128xf32>
      %c0_12 = arith.constant 0 : index
      %c0_13 = arith.constant 0 : index
      %16 = vector.load %arg3[%c0_12, %c0_13] : memref<8x128xf32, #tpu.memory_space<vmem>>, vector<8x128xf32>
      tpu.vector_store %arg3[%c0_12, %c0_13], %15 {strides = array<i32>} : memref<8x128xf32, #tpu.memory_space<vmem>>, vector<8x128xf32>,
    } else {
    }
    return
  }
  func.func @transform_0(%arg0: i32) -> (i32, i32) {
    %c0_i32 = arith.constant 0 : i32
    %c0_i32_0 = arith.constant 0 : i32
    return %arg0, %c0_i32 : i32, i32
  }
  func.func @transform_1(%arg0: i32) -> (i32, i32) {
    %c0_i32 = arith.constant 0 : i32
    %c0_i32_0 = arith.constant 0 : i32
    return %arg0, %c0_i32 : i32, i32
  }
  func.func @transform_2(%arg0: i32) -> (i32, i32) {
    %c0_i32 = arith.constant 0 : i32
    %c0_i32_0 = arith.constant 0 : i32
    %c0_i32_1 = arith.constant 0 : i32
    return %c0_i32, %c0_i32_0 : i32, i32
  }
}

</mosaic_0001>

<bundles_post_ra>
// kernel: tpu_custom_call.1
= control target key start
LH: loop header
LB: loop body
LE: loop exit
PB: predicated region body
PF: predicated region fallthrough
CT: control target
= control target key end

     0   :  { %7 = vsyncpa [#allocation4], 0  ;;  %s211_s0 = inlined_call_operand.hbm [shape: f32[16,128], index: 0, kind: input, shape index: {}]   ;;  %s212_s1 = inlined_call_operand.hbm [shape: f32[16,128], index: 1, kind: input, shape index: {}]   ;;  %s213_s2 = inlined_call_operand.hbm [shape: f32[8,128], index: 2, kind: output, shape index: {}]  }
   0x1   :  { %8 = vsyncpa [#allocation7], 0 }
   0x2   :  { %9 = vsyncpa [#allocation5], 0  ;;  %s155_s9 = smov [#allocation3]   ;;  %s83_s13 = scalar_lea.hbm %s211_s0, 256 }
   0x3   :  { %s15_s10 = sshll.u32 %s155_s9, 4  ;;  %p84_p0 = scmp.ne.s32.totalorder %s211_s0, %s83_s13  ;;  %s16_s10 = int_to_ptr.vmem [resolvable:$true] %s15_s10 }
   0x4   :  { %p87_p1 = scmp.lt.u32.totalorder %s83_s13, %s211_s0 }
   0x6   :  { %p89_p2 = pnand %p87_p1, %p84_p0 }
   0x8   :  { %92 = shalt.err (!%p89_p2)
}
   0x9   :  { %s93_s18 = scalar_lea.vmem %s16_s10, 256  ;;  %p98_p4 = scmp.lt.s32.totalorder %s16_s10, %s16_s10 }
   0xa   :  { %p94_p3 = scmp.ne.s32.totalorder %s16_s10, %s93_s18  ;;  %p99_p5 = scmp.lt.s32.totalorder %s93_s18, %s93_s18 }
   0xc   :  { %p100_p6 = por %p99_p5, %p98_p4 }
   0xe   :  { %p101_p7 = pnand %p100_p6, %p94_p3 }
  0x10   :  { %104 = shalt.err (!%p101_p7)
}
  0x11   :  { %s156_s19 = smov 128   ;;  %s157_s20 = smov 8  }
  0x12   :  { %21 = dma.hbm_to_vmem [thread:$0]  %s211_s0, 256, %s16_s10, [#allocation4], %s156_s19, %s156_s19, %s157_s20  }
  0x13   :  { %s158_s23 = smov [#allocation6]   ;;  %s105_s27 = scalar_lea.hbm %s212_s1, 256 }
  0x14   :  { %s27_s24 = sshll.u32 %s158_s23, 4  ;;  %p106_p8 = scmp.ne.s32.totalorder %s212_s1, %s105_s27  ;;  %s28_s24 = int_to_ptr.vmem [resolvable:$true] %s27_s24 }
  0x15   :  { %p109_p9 = scmp.lt.u32.totalorder %s105_s27, %s212_s1 }
  0x17   :  { %p111_p10 = pnand %p109_p9, %p106_p8 }
  0x19   :  { %114 = shalt.err (!%p111_p10)
}
  0x1a   :  { %s115_s4 = scalar_lea.vmem %s28_s24, 256  ;;  %p120_p12 = scmp.lt.s32.totalorder %s28_s24, %s28_s24 }
  0x1b   :  { %p116_p11 = scmp.ne.s32.totalorder %s28_s24, %s115_s4  ;;  %p121_p13 = scmp.lt.s32.totalorder %s115_s4, %s115_s4 }
  0x1d   :  { %p122_p0 = por %p121_p13, %p120_p12 }
  0x1f   :  { %p123_p1 = pnand %p122_p0, %p116_p11 }
  0x21   :  { %126 = shalt.err (!%p123_p1)
}
  0x22   :  { %33 = dma.hbm_to_vmem [thread:$0]  %s212_s1, 256, %s28_s24, [#allocation7], %s156_s19, %s156_s19, %s157_s20  }
  0x23   :  { %149 = dma.done.wait [#allocation4], 256  }
  0x24   :  { %150 = vsyncadd [#allocation4], 4294967040 }
  0x25   :  { %151 = dma.done.wait [#allocation7], 256  }
  0x26   :  { %152 = vsyncadd [#allocation7], 4294967040  ;;  %v45_v0 = vld [vmem:[#allocation3] sm:$0xff]  ;;  %v46_v1 = vld [vmem:[#allocation3 + $0x8] sm:$0xff]  ;;  %s159_s6 = smov [#allocation8]  }
  0x27   :  { %v47_v2 = vld [vmem:[#allocation6] sm:$0xff]  ;;  %v48_v3 = vld [vmem:[#allocation6 + $0x8] sm:$0xff]  ;;  %s68_s7 = sshll.u32 %s159_s6, 4  ;;  %s69_s7 = int_to_ptr.vmem [resolvable:$true] %s68_s7 }
  0x28   :  { %v49_v4 = vsub.f32 %v45_v0, %v47_v2  ;;  %v50_v5 = vsub.f32 %v46_v1, %v48_v3  ;;  %s127_s8 = scalar_lea.vmem %s69_s7, 128  ;;  %p132_p3 = scmp.lt.s32.totalorder %s69_s7, %s69_s7 }
  0x29   :  { %p128_p2 = scmp.ne.s32.totalorder %s69_s7, %s127_s8  ;;  %p133_p4 = scmp.lt.s32.totalorder %s127_s8, %s127_s8 }
  0x2a   :  { %v51_v6 = vmul.f32 %v49_v4, %v49_v4  ;;  %v52_v7 = vmul.f32 %v50_v5, %v50_v5 }
  0x2b   :  { %p134_p5 = por %p133_p4, %p132_p3 }
  0x2c   :  { %v54_v8 = vadd.f32 %v52_v7, %v51_v6 }
  0x2d   :  { %p135_p6 = pnand %p134_p5, %p128_p2 }
  0x2e   :  { %61 = vst [vmem:[#allocation8] sm:$0xff] %v54_v8 }
  0x2f   :  { %138 = shalt.err (!%p135_p6)
}
  0x30   :  { %s139_s10 = scalar_lea.hbm %s213_s2, 128 }
  0x31   :  { %p140_p7 = scmp.ne.s32.totalorder %s213_s2, %s139_s10  ;;  %p143_p8 = scmp.lt.u32.totalorder %s139_s10, %s213_s2 }
  0x33   :  { %p145_p9 = pnand %p143_p8, %p140_p7 }
  0x35   :  { %148 = shalt.err (!%p145_p9)
}
  0x36   :  { %71 = dma.vmem_to_hbm [thread:$0]  %s69_s7, 128, %s213_s2, [#allocation5]  }
  0x37   :  { %153 = dma.done.wait [#allocation5], 128  }
  0x38   :  { %154 = vsyncadd [#allocation5], 4294967168 }
  0x39   :  { %75 = vsyncpa [#allocation4], 1 }
  0x3a   :  { %76 = vsyncpa [#allocation7], 1 }
  0x3b   :  { %77 = vsyncpa [#allocation5], 1 }

</bundles_post_ra>
